<compile_context>
chip_gen: v7x
topology: tpu7x:2x2x1
jax: 0.10.0
libtpu: 0.0.40
codegen_flags: <defaults>
</compile_context>

<pallas_src>
import math
import functools

import jax
import jax.numpy as jnp
from jax.experimental import pallas as pl
from jax.experimental.pallas import tpu as pltpu


def gconv_matmul_kernel(w_ref, p_ref, b_ref, o_ref, *, apply_relu):
    """One lane-dense tile of out^T = W @ P  (+ bias, + ReLU).

    w_ref: (CoutR, K)   bf16   transformed group-conv weights, K = kH*kW*CinR
    p_ref: (K, TM)      bf16   im2col patch tile (M = B*Ho*Wo on the lane axis)
    b_ref: (CoutR, 1)   f32    replicated bias
    o_ref: (CoutR, TM)  f32
    """
    acc = jnp.dot(w_ref[...], p_ref[...], preferred_element_type=jnp.float32)
    acc = acc + b_ref[...]                 # broadcast (CoutR, 1) along dense lanes
    if apply_relu:
        acc = jnp.maximum(acc, 0.0)        # fused activation, f32, lane-dense
    o_ref[...] = acc.astype(o_ref.dtype)


def make_transformed_weight(weight, R_out):
    """weight: (Cout, Cin, R_in, kH, kW) -> transformed OIHW weight
    (Cout*R_out, Cin*R_in, kH, kW) for the C4 rotation group."""
    Cout, Cin, R_in, kH, kW = weight.shape
    slabs = []
    for o in range(R_out):
        idx = jnp.array([(i - o) % R_in for i in range(R_in)], dtype=jnp.int32)
        w_g = weight[:, :, idx, :, :]                     # (Cout, Cin, R_in, kH, kW)
        w_rot = jnp.rot90(w_g, k=o, axes=(-2, -1))        # group transform (rotation)
        slabs.append(w_rot)
    tw = jnp.stack(slabs, axis=1)                         # (Cout, R_out, Cin, R_in, kH, kW)
    return tw.reshape(Cout * R_out, Cin * R_in, kH, kW)   # OIHW


def gconv2d_bn_act(x, weight, bias, *, padding=1, activation="relu"):
    """x: (B, Cin, R_in, H, W); weight: (Cout, Cin, R_in, kH, kW); bias: (Cout,)
    returns: (B, Cout, R_out, H_out, W_out)   (stride=1, dilation=1, groups=1)"""
    B, Cin, R_in, H, W = x.shape
    Cout, _, _, kH, kW = weight.shape
    R_out = R_in                                          # C4 regular representation
    CinR, CoutR = Cin * R_in, Cout * R_out

    # ---- parameter setup (plain JAX, done once) ----
    tw_oihw = make_transformed_weight(weight, R_out)      # (CoutR, CinR, kH, kW)
    # flatten to (CoutR, K) with K ordered (kh, kw, ci) -- ci fastest
    w_flat = jnp.transpose(tw_oihw, (0, 2, 3, 1)).reshape(CoutR, kH * kW * CinR)
    tb = jnp.repeat(bias, R_out).reshape(CoutR, 1).astype(jnp.float32)

    # ---- layout: fold group axis into channels, pad, build im2col (K, M) ----
    # TODO(synk): in a multi-layer network keep activations in this folded,
    # channels-last layout end-to-end to avoid the per-layer transposes here.
    x_nhwc = jnp.transpose(x.reshape(B, CinR, H, W), (0, 2, 3, 1))
    x_pad = jnp.pad(x_nhwc, ((0, 0), (padding, padding), (padding, padding), (0, 0)))
    Hp, Wp = H + 2 * padding, W + 2 * padding
    Ho, Wo = Hp - kH + 1, Wp - kW + 1
    K = kH * kW * CinR
    M = B * Ho * Wo

    taps = [x_pad[:, kh:kh + Ho, kw:kw + Wo, :]           # (B, Ho, Wo, CinR) per tap
            for kh in range(kH) for kw in range(kW)]
    patches = jnp.stack(taps, axis=0)                     # (kH*kW, B, Ho, Wo, CinR)
    patches_t = jnp.transpose(patches, (0, 4, 1, 2, 3)).reshape(K, M)  # K=(kh,kw,ci)

    # bf16 operands for the MXU, f32 accumulation inside the kernel
    w_bf = w_flat.astype(jnp.bfloat16)
    p_bf = patches_t.astype(jnp.bfloat16)

    # lane-dense M tiles; 256 lanes -> 2 parallel grid steps at the example shapes
    if M % 256 == 0:
        TM = 256
    elif M % 128 == 0:
        TM = 128
    else:
        TM = M
    grid = (M // TM,)

    kernel = functools.partial(gconv_matmul_kernel, apply_relu=(activation == "relu"))
    out_t = pl.pallas_call(
        kernel,
        out_shape=jax.ShapeDtypeStruct((CoutR, M), jnp.float32),
        grid=grid,
        in_specs=[
            pl.BlockSpec((CoutR, K), lambda i: (0, 0)),   # full weight each step
            pl.BlockSpec((K, TM), lambda i: (0, i)),      # im2col tile, dense lanes
            pl.BlockSpec((CoutR, 1), lambda i: (0, 0)),   # bias
        ],
        out_specs=pl.BlockSpec((CoutR, TM), lambda i: (0, i)),
        compiler_params=pltpu.CompilerParams(dimension_semantics=("parallel",)),
    )(w_bf, p_bf, tb)

    # (CoutR, B*Ho*Wo) -> (B, Cout, R_out, Ho, Wo)
    out = jnp.transpose(out_t.reshape(CoutR, B, Ho, Wo), (1, 0, 2, 3))
    return out.reshape(B, Cout, R_out, Ho, Wo).astype(x.dtype)


if __name__ == "__main__":
    # module config: GConv2dBnAct(C4, in_channels=4, in_repr=4, out_channels=4,
    #                             out_repr=4, kernel_size=3, padding=1, bias=True,
    #                             activation='relu', batchnorm=False, dropout=0.0)
    B, Cin, R_in, H, W = 2, 4, 4, 16, 16
    Cout, R_out = 4, 4
    kH = kW = 3
    padding = 1

    key = jax.random.PRNGKey(0)
    kx, kw_, kb = jax.random.split(key, 3)

    # deterministic parameter init matching GConv2d.reset_parameters
    fan_in = Cin * kH * kW                    # fan_in of weight[:, :, 0]
    weight_bound = math.sqrt(6.0 / fan_in)
    bias_bound = 1.0 / math.sqrt(fan_in)
    weight = jax.random.uniform(kw_, (Cout, Cin, R_in, kH, kW), jnp.float32,
                                -weight_bound, weight_bound)
    bias = jax.random.uniform(kb, (Cout,), jnp.float32, -bias_bound, bias_bound)

    x = jax.random.normal(kx, (B, Cin, R_in, H, W), dtype=jnp.float32)

    out = gconv2d_bn_act(x, weight, bias, padding=padding, activation="relu")
    out = jax.block_until_ready(out)

    # pure-JAX reference with the same bf16-rounded operands (kernel feeds the MXU
    # bf16 inputs and accumulates in f32), stride=1 semantics of the PyTorch forward
    tw = make_transformed_weight(weight, R_out)
    xq = x.reshape(B, Cin * R_in, H, W).astype(jnp.bfloat16).astype(jnp.float32)
    twq = tw.astype(jnp.bfloat16).astype(jnp.float32)
    ref = jax.lax.conv_general_dilated(
        xq, twq, (1, 1),
        [(padding, padding), (padding, padding)],
        dimension_numbers=("NCHW", "OIHW", "NCHW"),
        precision=jax.lax.Precision.HIGHEST)
    ref = ref + jnp.repeat(bias, R_out)[None, :, None, None]
    ref = jnp.maximum(ref, 0.0).reshape(B, Cout, R_out, H, W)

    assert out.shape == (B, Cout, R_out, H, W), out.shape
    err = float(jnp.max(jnp.abs(out - ref)))
    assert jnp.allclose(out, ref, atol=2e-3, rtol=2e-3), err
    print("KERNEL_OK")
</pallas_src>

<mosaic_0001>
module attributes {stable_mosaic.version = 11 : i64} {
  func.func @gconv_matmul_kernel(%arg0: i32, %arg1: memref<16x144xbf16, #tpu.memory_space<vmem>>, %arg2: memref<144x256xbf16, #tpu.memory_space<vmem>>, %arg3: memref<16x1xf32, #tpu.memory_space<vmem>>, %arg4: memref<16x256xf32, #tpu.memory_space<vmem>>) attributes {dimension_semantics = [#tpu.dimension_semantics<parallel>], iteration_bounds = array<i64: 2>, scalar_prefetch = 0 : i64, scratch_operands = 0 : i64, tpu.core_type = #tpu.core_type<tc>, window_params = [{pipeline_mode = #tpu.pipeline_mode<synchronous>, transform_indices = @transform_0, window_bounds = array<i64: 16, 144>}, {transform_indices = @transform_1, window_bounds = array<i64: 144, 256>}, {pipeline_mode = #tpu.pipeline_mode<synchronous>, transform_indices = @transform_2, window_bounds = array<i64: 16, 1>}, {transform_indices = @transform_3, window_bounds = array<i64: 16, 256>}]} {
    %c0 = arith.constant 0 : index
    %c0_0 = arith.constant 0 : index
    %0 = vector.load %arg1[%c0, %c0_0] : memref<16x144xbf16, #tpu.memory_space<vmem>>, vector<16x144xbf16>
    %c0_1 = arith.constant 0 : index
    %c0_2 = arith.constant 0 : index
    %1 = vector.load %arg2[%c0_1, %c0_2] : memref<144x256xbf16, #tpu.memory_space<vmem>>, vector<144x256xbf16>
    %cst = arith.constant dense<0.000000e+00> : vector<16x256xf32>
    %2 = tpu.matmul %0, %1, %cst {dimension_numbers = #tpu.dot_dimension_numbers<[1], [0], [0], [1], [0, 0, 1, 1], [], []>} : vector<16x144xbf16>, vector<144x256xbf16>, vector<16x256xf32> -> vector<16x256xf32>
    %c0_3 = arith.constant 0 : index
    %c0_4 = arith.constant 0 : index
    %3 = vector.load %arg3[%c0_3, %c0_4] : memref<16x1xf32, #tpu.memory_space<vmem>>, vector<16x1xf32>
    %4 = vector.broadcast %3 : vector<16x1xf32> to vector<16x256xf32>
    %5 = arith.addf %2, %4 : vector<16x256xf32>
    %cst_5 = arith.constant 0.000000e+00 : f32
    %6 = vector.broadcast %cst_5 : f32 to vector<16x256xf32>
    %7 = arith.maximumf %5, %6 : vector<16x256xf32>
    %c0_6 = arith.constant 0 : index
    %c0_7 = arith.constant 0 : index
    %8 = vector.load %arg4[%c0_6, %c0_7] : memref<16x256xf32, #tpu.memory_space<vmem>>, vector<16x256xf32>
    tpu.vector_store %arg4[%c0_6, %c0_7], %7 {strides = array<i32>} : memref<16x256xf32, #tpu.memory_space<vmem>>, vector<16x256xf32>,
    return
  }
  func.func @transform_0(%arg0: i32) -> (i32, i32) {
    %c0_i32 = arith.constant 0 : i32
    %c0_i32_0 = arith.constant 0 : i32
    %c0_i32_1 = arith.constant 0 : i32
    return %c0_i32, %c0_i32_0 : i32, i32
  }
  func.func @transform_1(%arg0: i32) -> (i32, i32) {
    %c0_i32 = arith.constant 0 : i32
    %c0_i32_0 = arith.constant 0 : i32
    return %c0_i32, %arg0 : i32, i32
  }
  func.func @transform_2(%arg0: i32) -> (i32, i32) {
    %c0_i32 = arith.constant 0 : i32
    %c0_i32_0 = arith.constant 0 : i32
    %c0_i32_1 = arith.constant 0 : i32
    return %c0_i32, %c0_i32_0 : i32, i32
  }
  func.func @transform_3(%arg0: i32) -> (i32, i32) {
    %c0_i32 = arith.constant 0 : i32
    %c0_i32_0 = arith.constant 0 : i32
    return %c0_i32, %arg0 : i32, i32
  }
}

</mosaic_0001>

<bundles_post_ra>
// kernel: tpu_custom_call.1
= control target key start
LH: loop header
LB: loop body
LE: loop exit
PB: predicated region body
PF: predicated region fallthrough
CT: control target
= control target key end

     0   :  { %8 = vsyncpa [#allocation3], 0  ;;  %s904_s0 = inlined_call_operand.vmem [shape: bf16[16,144], index: 0, kind: input, shape index: {}]   ;;  %s905_s1 = inlined_call_operand.hbm [shape: bf16[144,512], index: 1, kind: input, shape index: {}]   ;;  %s906_s2 = inlined_call_operand.vmem [shape: f32[16,1], index: 2, kind: input, shape index: {}]   ;;  %s907_s3 = inlined_call_operand.hbm [shape: f32[16,512], index: 3, kind: output, shape index: {}]  }
   0x1   :  { %10 = vsyncpa [#allocation3 + $0x1], 0 }
   0x2   :  { %11 = vsyncpa [#allocation4], 0 }
   0x3   :  { %13 = vsyncpa [#allocation4 + $0x1], 0  ;;  %s713_s12 = smov 0   ;;  %s715_s13 = smov 0  }
   0x4   :  { %s717_s14 = smov 0   ;;  %s719_s15 = smov 0  }
   0x5 LB: > { %s734_s16 = sadd.s32 4294967295, %s682_s15   ;;  %s465_s17 = sadd.s32 4294967294, %s682_s15   ;;  %s682_s15 = sphi %s719_s15, %s920_s15   ;;  %s678_s14 = sphi %s717_s14, %s919_s14   ;;  %s674_s13 = sphi %s715_s13, %s918_s13   ;;  %s670_s12 = sphi %s713_s12, %s917_s12  }
   0x6   : > { %s738_s18 = sadd.s32 1, %s682_s15   ;;  %s47_s19 = sadd.s32 1, %s678_s14 }
   0x7   : > { %s44_s20 = ssub.s32 %s682_s15, %s738_s18  ;;  %p54_p0 = scmp.ne.s32.totalorder %s678_s14, %s674_s13 }
   0x8   : > { %p45_p1 = scmp.eq.s32.totalorder %s44_s20, 0  ;;  %p55_p2 = scmp.eq.s32.totalorder %s682_s15, 0 }
   0x9   : > { %p60_p3 = scmp.ne.s32.totalorder %s674_s13, %s670_s12  ;;  %p61_p4 = scmp.eq.s32.totalorder %s734_s16, 0 }
   0xa   : > { %s750_s21 = scalar_select %p45_p1, %s678_s14, %s47_s19  }
   0xb   : > { %p56_p5 = por %p55_p2, %p54_p0  ;;  %p752_p6 = por %p61_p4, %p60_p3 }
   0xc   : > { %p105_p7 = scmp.eq.s32.totalorder %s734_s16, 1  ;;  %p111_p8 = scmp.eq.s32.totalorder %s465_s17, 1 }
   0xd   : > { %p514_p10 = scmp.lt.s32.totalorder %s682_s15, 2  ;;  %s137_s25 = sand.u32 1, %s678_s14  }
   0xe   : > { %p759_p11 = por %p105_p7, %p54_p0  ;;  %p763_p12 = por %p111_p8, %p60_p3 }
   0xf   : > { %s498_s26 = sshll.u32 %s682_s15, 7  ;;  %s500_s27 = smul.u32 144, %s137_s25 }
  0x10   : > { %s910_s23 = scalar_select %p759_p11, 1, 0 }
  0x11   : > { %s911_s24 = scalar_select %p763_p12, 1, 0 }
  0x12   : > { %s772_s30 = scalar_lea.hbm %s905_s1, %s498_s26  ;;  %p774_p13 = pnand %p514_p10, %p56_p5 }
  0x13   : > { %s141_s5 = scalar_lea.vmem [#allocation2], %s500_s27  ;;  %s781_s7 = scalar_lea.sflag [#allocation3], %s137_s25 }
  0x14   : > { %s148_s6 = sshll.u32 %s141_s5, 4  ;;  %s586_s8 = scalar_lea.hbm %s772_s30, 2304  ;;  %s778_s6 = int_to_ptr.vmem [resolvable:$true] %s148_s6 }
  0x15   : > { %p587_p1 = scmp.ne.s32.totalorder %s772_s30, %s586_s8  ;;  %p588_p2 = pneg %p774_p13 }
  0x16   : > { %s591_s11 = scalar_lea.hbm %s905_s1, 4608  ;;  %p592_p5 = scmp.lt.u32.totalorder %s772_s30, %s905_s1 }
  0x17   : > { %p589_p3 = pnand %p588_p2, %p587_p1  ;;  %p593_p7 = scmp.lt.u32.totalorder %s591_s11, %s586_s8 }
  0x18   : > { %p595_p10 = scmp.lt.u32.totalorder %s586_s8, %s772_s30 }
  0x19   : > { %p590_p4 = pneg %p589_p3  ;;  %p594_p8 = por %p593_p7, %p592_p5 }
  0x1b   : > { %p596_p9 = por %p595_p10, %p594_p8 }
  0x1d   : > { %p597_p0 = pnand %p596_p9, %p590_p4 }
  0x1f   : > { %600 = shalt.err (!%p597_p0)
}
  0x20   : > { %s601_s20 = scalar_lea.vmem %s778_s6, 2304  ;;  %s684_s25 = smov [#allocation2]  }
  0x21   : > { %p602_p1 = scmp.ne.s32.totalorder %s778_s6, %s601_s20  ;;  %s606_s26 = sshll.u32 %s684_s25, 4  ;;  %s607_s26 = int_to_ptr.vmem [resolvable:$false] %s606_s26 }
  0x22   : > { %s608_s27 = scalar_lea.vmem %s607_s26, 4608  ;;  %p609_p11 = scmp.lt.s32.totalorder %s778_s6, %s607_s26 }
  0x23   : > { %p604_p3 = pnand %p602_p1, %p588_p2  ;;  %p610_p5 = scmp.lt.s32.totalorder %s608_s27, %s601_s20 }
  0x25   : > { %p605_p12 = pneg %p604_p3  ;;  %p611_p7 = por %p610_p5, %p609_p11 }
  0x27   : > { %p612_p8 = pnand %p611_p7, %p605_p12 }
  0x29   : > { %615 = shalt.err (!%p612_p8)
}
  0x2a   : > { %s685_s28 = smov 256   ;;  %s686_s29 = smov 128  }
  0x2b   : > { %s687_s5 = smov 8   ;;  %p156_p9 = scmp.lt.s32.totalorder %s682_s15, 3 }
  0x2c   : > { %509 = dma.hbm_to_vmem [thread:$0]  (!%p774_p13), %s772_s30, 2304, %s778_s6, %s781_s7, %s685_s28, %s686_s29, %s687_s5  }
  0x2d   : > { %p913_p0 = scmp.ge.s32.totalorder %s682_s15, 1 }
  0x2f   : > { %p157_p2 = pnand %p913_p0, %p156_p9 }
  0x30   : > { %s813_s8 = sand.u32 (!%p157_p2), 1, %s674_s13  }
  0x31   : > { %160 = sbr.rel (%p157_p2) target bundleno = 329 (0x149), region = 32  ;;  %s163_s10 = scalar_lea.sflag (!%p157_p2), [#allocation3], %s813_s8 }
  0x32   : > { %s501_s9 = smul.u32 (!%p157_p2), 144, %s813_s8 }
  0x34   : > { %s817_s11 = scalar_lea.vmem (!%p157_p2), [#allocation2], %s501_s9 }
  0x38   : > { %661 = dma.done.wait (%p752_p6), %s163_s10, 2304  }
  0x39   : > { %663 = vsyncadd (%p752_p6), %s163_s10, 4294964992  ;;  %v688_v0 = vmov 0   ;;  %v556_v1 = vld [vmem:[%s817_s11 + $0x4] ss:$8 sps:$4 sm:$0xff]   ;;  %v558_v2 = vld [vmem:[%s817_s11] ss:$8 sps:$4 sm:$0xff]  }
  0x3a   : > { %555 = vset.pattern.permute.xlu0 %v688_v0  ;;  %327 = vmatprep.subr.bf16.mxu0 %v556_v1  ;;  %v559_v3 = vld [vmem:[%s817_s11 + $0x14] ss:$8 sps:$4 sm:$0xff]   ;;  %v561_v4 = vld [vmem:[%s817_s11 + $0x10] ss:$8 sps:$4 sm:$0xff]   ;;  %v562_v5 = vld [vmem:[%s817_s11 + $0x24] ss:$8 sps:$4 sm:$0xff]  }
  0x3b   : > { %328 = vmatpush1.bf16.msra.mxu0 %v558_v2  ;;  %v564_v6 = vld [vmem:[%s817_s11 + $0x20] ss:$8 sps:$4 sm:$0xff]   ;;  %v565_v7 = vld [vmem:[%s817_s11 + $0x34] ss:$8 sps:$4 sm:$0xff]   ;;  %v567_v8 = vld [vmem:[%s817_s11 + $0x30] ss:$8 sps:$4 sm:$0xff]  }
  0x3c   : > { %329 = vmatprep.subr.bf16.mxu0 %v559_v3  ;;  %v568_v9 = vld [vmem:[%s817_s11 + $0x44] ss:$8 sps:$4 sm:$0xff]   ;;  %vm323_vm0 = vcmask 130048   ;;  %v570_v12 = vld [vmem:[%s817_s11 + $0x40] ss:$8 sps:$4 sm:$0xff]   ;;  %s471_s25 = sshll.u32 %s813_s8, 5 }
  0x3d   : > { %v585_v10 = vld [vmem:[%s904_s0 + $0x4] ss:$8 sps:$4 sm:$0xff]   ;;  %v573_v15 = vld [vmem:[%s817_s11 + $0x50] ss:$8 sps:$4 sm:$0xff]   ;;  %v576_v17 = vld [vmem:[%s817_s11 + $0x60] ss:$8 sps:$4 sm:$0xff]  }
  0x3e   : > { %v212_v11 = vld [vmem:[%s906_s2] sm:$0xff]  ;;  %492 = vmatprep.mubr.msk.bf16.mxu0 %vm323_vm0, %v585_v10  ;;  %v213_v13 = vld [vmem:[%s906_s2 + $0x8] sm:$0xff]  ;;  %s188_s26 = scalar_lea.vmem [#allocation5], %s471_s25  ;;  %s499_s28 = sshll.u32 %s734_s16, 8 }
  0x3f   : > { %330 = vmatpush1.bf16.msra.mxu0 %v561_v4  ;;  %216 = vperm.xlu0 %555, %v212_v11   ;;  %v571_v14 = vld [vmem:[%s817_s11 + $0x54] ss:$8 sps:$4 sm:$0xff]   ;;  %v574_v16 = vld [vmem:[%s817_s11 + $0x64] ss:$8 sps:$4 sm:$0xff]   ;;  %v579_v19 = vld [vmem:[%s817_s11 + $0x70] ss:$8 sps:$4 sm:$0xff]   ;;  %s860_s9 = scalar_lea.hbm %s907_s3, %s499_s28 }
  0x40   : > { %331 = vmatprep.subr.bf16.mxu0 %v562_v5  ;;  %v577_v18 = vld [vmem:[%s817_s11 + $0x74] ss:$8 sps:$4 sm:$0xff]   ;;  %v580_v20 = vld [vmem:[%s817_s11 + $0x84] ss:$8 sps:$4 sm:$0xff]   ;;  %v582_v21 = vld [vmem:[%s817_s11 + $0x80] ss:$8 sps:$4 sm:$0xff]  }
  0x41   : > { %v583_v22 = vld [vmem:[%s904_s0] ss:$8 sps:$4 sm:$0xff]   ;;  %s392_s27 = sshll.u32 %s188_s26, 4  ;;  %s379_s16 = scalar_lea.sflag [#allocation4], %s813_s8  ;;  %s855_s27 = int_to_ptr.vmem [resolvable:$true] %s392_s27 }
  0x42   : > { %s616_s10 = scalar_lea.vmem %s855_s27, 512  ;;  %p914_p11 = scmp.ne.s32.totalorder %s910_s23, 0 }
  0x43   : > { %332 = vmatpush1.bf16.msra.mxu0 %v564_v6  ;;  %221 = vperm.xlu0 %555, %v213_v13   ;;  %p617_p6 = scmp.ne.s32.totalorder %s855_s27, %s616_s10  ;;  %s689_s11 = smov [#allocation5]  }
  0x44   : > { %333 = vmatprep.subr.bf16.mxu0 %v565_v7  ;;  %s620_s22 = sshll.u32 %s689_s11, 4  ;;  %s621_s22 = int_to_ptr.vmem [resolvable:$false] %s620_s22 }
  0x45   : > { %p618_p12 = pnand %p617_p6, %p914_p11  ;;  %s622_s30 = scalar_lea.vmem %s621_s22, 1024 }
  0x46   : > { %p623_p4 = scmp.lt.s32.totalorder %s855_s27, %s621_s22  ;;  %p624_p10 = scmp.lt.s32.totalorder %s622_s30, %s616_s10 }
  0x47   : > { %334 = vmatpush1.bf16.msra.mxu0 %v567_v8  ;;  %p619_p13 = pneg %p618_p12 }
  0x48   : > { %335 = vmatprep.subr.bf16.mxu0 %v568_v9  ;;  %p625_p1 = por %p624_p10, %p623_p4 }
  0x4a   : > { %p626_p3 = pnand %p625_p1, %p619_p13 }
  0x4b   : > { %336 = vmatpush1.bf16.msra.mxu0 %v570_v12 }
  0x4c   : > { %337 = vmatprep.subr.bf16.mxu0 %v571_v14 }
  0x4f   : > { %338 = vmatpush1.bf16.msra.mxu0 %v573_v15 }
  0x50   : > { %339 = vmatprep.subr.bf16.mxu0 %v574_v16 }
  0x53   : > { %340 = vmatpush1.bf16.msra.mxu0 %v576_v17 }
  0x54   : > { %341 = vmatprep.subr.bf16.mxu0 %v577_v18 }
  0x57   : > { %342 = vmatpush1.bf16.msra.mxu0 %v579_v19 }
  0x58   : > { %343 = vmatprep.subr.bf16.mxu0 %v580_v20 }
  0x5b   : > { %344 = vmatpush1.bf16.msra.mxu0 %v582_v21 }
  0x5e   : > { %360 = vmatmul.mubr.bf16.vlgmr.msra.gmra.mrb[0].mxu0 %v583_v22 }
  0xbe   : > { %v217_v23 = vpop.permute.xlu0 %216 }
  0xc2   : > { %v222_v27 = vpop.permute.xlu0 %221 }
 0x131   : > { %v361_v24 = vpop.f32.mrb[0].mxu0 }
 0x132   : > { %v362_v25 = vadd.f32 %v361_v24, %v217_v23  ;;  %v363_v26 = vpop.f32.mrb[1].mxu0 }
 0x133   : > { %v364_v28 = vadd.f32 %v363_v26, %v217_v23  ;;  %v365_v29 = vpop.f32.mrb[2].mxu0 }
 0x134   : > { %v370_v30 = vmax.f32 %v362_v25, 0.0  ;;  %v366_v31 = vadd.f32 %v365_v29, %v222_v27  ;;  %v367_v32 = vpop.f32.mrb[3].mxu0 }
 0x135   : > { %v371_v33 = vmax.f32 %v364_v28, 0.0  ;;  %v368_v34 = vadd.f32 %v367_v32, %v222_v27 }
 0x136   : > { %374 = vst [vmem:[%s188_s26] sm:$0xff] %v370_v30  ;;  %v372_v35 = vmax.f32 %v366_v31, 0.0 }
 0x137   : > { %375 = vst [vmem:[%s188_s26 + $0x8] sm:$0xff] %v371_v33  ;;  %v373_v36 = vmax.f32 %v368_v34, 0.0 }
 0x138   : > { %376 = vst [vmem:[%s188_s26 + $0x10] sm:$0xff] %v372_v35 }
 0x139   : > { %377 = vst [vmem:[%s188_s26 + $0x18] sm:$0xff] %v373_v36 }
 0x13a   : > { %629 = shalt.err (!%p626_p3)
}
 0x13b   : > { %s630_s4 = scalar_lea.hbm %s860_s9, 512  ;;  %s634_s17 = scalar_lea.hbm %s907_s3, 1024 }
 0x13c   : > { %p631_p5 = scmp.ne.s32.totalorder %s860_s9, %s630_s4  ;;  %p635_p9 = scmp.lt.u32.totalorder %s860_s9, %s907_s3 }
 0x13d   : > { %p636_p0 = scmp.lt.u32.totalorder %s634_s17, %s630_s4  ;;  %p638_p6 = scmp.lt.u32.totalorder %s630_s4, %s860_s9 }
 0x13e   : > { %p632_p7 = pnand %p631_p5, %p914_p11 }
 0x13f   : > { %p637_p2 = por %p636_p0, %p635_p9 }
 0x140   : > { %p633_p8 = pneg %p632_p7 }
 0x141   : > { %p639_p12 = por %p638_p6, %p637_p2 }
 0x143   : > { %p640_p13 = pnand %p639_p12, %p633_p8 }
 0x145   : > { %643 = shalt.err (!%p640_p13)
}
 0x146   : > { %s690_s25 = smov 256   ;;  %s691_s26 = smov 512  }
 0x147   : > { %s692_s28 = smov 16  }
 0x148   : > { %504 = dma.vmem_to_hbm [thread:$0]  (%p914_p11), %s855_s27, 512, %s860_s9, %s379_s16, %s690_s25, %s691_s26, %s692_s28  }
 0x149 PF: > { %s407_s29 = sand.u32 1, %s670_s12   ;;  %p915_p4 = scmp.ne.s32.totalorder %s911_s24, 0 }
 0x14a   : > { %p916_p10 = scmp.ge.s32.totalorder %s682_s15, 2  ;;  %s408_s5 = scalar_lea.sflag [#allocation4], %s407_s29 }
 0x14c   : > { %p511_p1 = pnand %p916_p10, %p915_p4 }
 0x14e   : > { %665 = dma.done.wait (!%p511_p1), %s408_s5, 512  }
 0x14f   : > { %667 = vsyncadd (!%p511_p1), %s408_s5, 4294966784  ;;  %p16_p3 = scmp.ge.s32.totalorder %s738_s18, 4   ;;  %s917_s12 = smov %s674_s13 }
 0x150   : > { %s918_s13 = smov %s678_s14  ;;  %s919_s14 = smov %s750_s21 }
 0x151   : > { %s920_s15 = smov %s738_s18  ;;  %18 = sbr.rel (!%p16_p3) target bundleno = 5 (0x5), region = 77 }
 0x158   :  { %413 = vsyncpa [#allocation3], 1 }
 0x159   :  { %415 = vsyncpa [#allocation3 + $0x1], 1 }
 0x15a   :  { %416 = vsyncpa [#allocation4], 1 }
 0x15b   :  { %418 = vsyncpa [#allocation4 + $0x1], 1 }

</bundles_post_ra>
